<compile_context>
chip_gen: v7x
topology: tpu7x:2x2x1
jax: 0.10.0
libtpu: 0.0.40
codegen_flags: <defaults>
</compile_context>

<pallas_src>
import functools

import jax
import jax.numpy as jnp
from jax.experimental import pallas as pl
from jax.experimental.pallas import tpu as pltpu

EPS = 1e-6


def _sublayer_connection_kernel(x_ref, w_ref, wb_ref, gamma_ref, beta_ref, o_ref,
                                *, n_col):
    """One (tm, tn) output tile: residual + Linear(LayerNorm(x)) column block."""
    tn = o_ref.shape[-1]
    x = x_ref[...].astype(jnp.float32)                    # (tm, H), LN in f32
    H = x.shape[-1]

    gamma = gamma_ref[...].astype(jnp.float32)            # (1, H)
    beta = beta_ref[...].astype(jnp.float32)              # (1, H)
    wb = wb_ref[...].astype(jnp.float32)                  # (1, tn)

    # --- LayerNorm stats: fused single pass (s1 & s2 together). -------------
    # NOTE: unbiased (N-1) variance + division by (std + eps) matches the
    # Annotated-Transformer LayerNorm in the reference, not torch.nn.LayerNorm.
    s1 = jnp.sum(x, axis=-1, keepdims=True)               # (tm, 1)
    s2 = jnp.sum(x * x, axis=-1, keepdims=True)           # (tm, 1)
    mean = s1 * (1.0 / H)
    var_unbiased = (s2 - mean * s1) * (1.0 / max(H - 1, 1))
    var_unbiased = jnp.maximum(var_unbiased, 0.0)         # guard cancellation
    std = jnp.sqrt(var_unbiased)
    inv = pl.reciprocal(std + EPS, approx=True)           # EUP slot (cheap)
    normed = (gamma * (x - mean)) * inv + beta

    # --- sublayer: Linear(H, H), tn output columns. bf16 MXU, f32 accumulate.
    y = jnp.dot(normed.astype(jnp.bfloat16), w_ref[...],
                preferred_element_type=jnp.float32)       # (tm, tn)
    y = y + wb

    # --- dropout (eval mode => identity) + residual --------------------------
    # TODO(synk): training-mode dropout would need the in-kernel PRNG.
    if n_col == 1:
        x_res = x
    else:
        # Column-split path: tn is a multiple of 128 and divides H exactly,
        # so this in-tile slice is always aligned and in bounds.
        col0 = pl.multiple_of(pl.program_id(1) * tn, tn)
        x_res = x_ref[:, pl.ds(col0, tn)].astype(jnp.float32)
    o_ref[...] = (x_res + y).astype(o_ref.dtype)


def _vmem_capacity_bytes(default_bytes=64 << 20):
    """Physical VMEM per core; conservative 64 MiB (v7x) fallback."""
    try:
        info = pltpu.get_tpu_info()
        cap = getattr(info, "vmem_capacity_bytes", None)
        if cap:
            return int(cap)
    except Exception:
        pass
    return default_bytes


def _plan_tiles(M, H, x_itemsize, *, tn_req=512, tm_cap=1024):
    """Pick (tm, tn, n_col, vmem_limit) from the per-chip VMEM budget."""
    cap = _vmem_capacity_bytes()
    # Leave headroom for compiler scratch/semaphores:
    # ~52 MiB usable on v7x (64 MiB phys), ~108 MiB on v5e/v6e (128 MiB phys).
    budget = max(min(cap - (12 << 20), int(cap * 0.85)), 16 << 20)

    # ---- Column split of the bf16 weight (needed for large H on v7x). ------
    w_full = H * H * 2                                    # bf16, single-buffered
    if w_full <= budget // 3 or H % 128 != 0 or H <= max(tn_req, 128):
        tn, n_col = H, 1
        w_resident = w_full                               # pl.Buffered(1)
    else:
        col_cap = max(128, (budget // 3) // (2 * H * 2))  # double-buffered cols
        tn = 128
        cand = 128
        while cand <= min(tn_req, col_cap):
            if H % cand == 0:
                tn = cand                                 # largest 128-mult divisor
            cand += 128
        n_col = H // tn
        w_resident = 2 * H * tn * 2                       # pl.Buffered(2)

    # ---- Row tile from the remaining budget (pipeline bufs + in-kernel temps).
    params = 4 * H * 4 + 4 * tn * 4 + (1 << 20)           # gamma/beta/bias + slack
    per_row = (2 * H * x_itemsize                         # x tile, 2 pipeline bufs
               + 2 * tn * x_itemsize                      # out tile, 2 pipeline bufs
               + 2 * H * 4                                # f32 working set in kernel
               + H * 2                                    # bf16 `normed`
               + tn * 4)                                  # f32 matmul accumulator
    remaining = max(budget - w_resident - params, per_row * 8)
    tm = remaining // per_row
    tm = min(tm, tm_cap, M)

    row_step = 16 if x_itemsize == 2 else 8               # bf16 sublane packing
    if tm >= M:
        tm = M                                            # full-extent block is legal
    elif tm >= 256:
        tm = (tm // 256) * 256                            # 256-tall MXU (v6e/v7x)
    elif tm >= 128:
        tm = 128
    else:
        tm = max(row_step, (tm // row_step) * row_step)

    needed = (w_resident + params
              + tm * (2 * H * x_itemsize + 2 * tn * x_itemsize
                      + 2 * H * 4 + H * 2 + tn * 4))
    vmem_limit = int(min(cap - (8 << 20), max(budget, int(needed * 1.2))))
    return tm, tn, n_col, vmem_limit


def sublayer_connection(x, w, wb, gamma, beta, *, tn_req=512, tm_cap=1024):
    """forward(x) = x + dropout(Linear(LayerNorm(x))), dropout in eval mode.

    x: (B, S, H); w: (H, H); wb, gamma, beta: (H,).
    """
    B, S, H = x.shape
    M = B * S
    x2 = x.reshape(M, H)

    x_itemsize = jnp.dtype(x.dtype).itemsize
    tm, tn, n_col, vmem_limit = _plan_tiles(M, H, x_itemsize,
                                            tn_req=tn_req, tm_cap=tm_cap)
    n_row = pl.cdiv(M, tm)                                # ragged last block OK

    # bf16 weight halves MXU time and resident VMEM; bias/LN params stay f32.
    w_bf16 = w.astype(jnp.bfloat16)
    wb2 = wb.reshape(1, H).astype(jnp.float32)
    gamma2 = gamma.reshape(1, H).astype(jnp.float32)
    beta2 = beta.reshape(1, H).astype(jnp.float32)

    invariant = pl.Buffered(1)                            # grid-invariant operands
    w_mode = pl.Buffered(2) if n_col > 1 else invariant   # stream cols only if split

    kernel = functools.partial(_sublayer_connection_kernel, n_col=n_col)

    out = pl.pallas_call(
        kernel,
        out_shape=jax.ShapeDtypeStruct((M, H), x.dtype),
        grid_spec=pltpu.PrefetchScalarGridSpec(
            num_scalar_prefetch=0,
            grid=(n_row, n_col),
            in_specs=[
                pl.BlockSpec((tm, H), lambda i, j: (i, 0)),           # x rows (resident over j)
                pl.BlockSpec((H, tn), lambda i, j: (0, j),
                             pipeline_mode=w_mode),                   # linear weight (bf16)
                pl.BlockSpec((1, tn), lambda i, j: (0, j),
                             pipeline_mode=w_mode),                   # linear bias
                pl.BlockSpec((1, H), lambda i, j: (0, 0),
                             pipeline_mode=invariant),                # LayerNorm gamma (a_2)
                pl.BlockSpec((1, H), lambda i, j: (0, 0),
                             pipeline_mode=invariant),                # LayerNorm beta  (b_2)
            ],
            out_specs=pl.BlockSpec((tm, tn), lambda i, j: (i, j)),
        ),
        compiler_params=pltpu.CompilerParams(
            dimension_semantics=("parallel", "parallel"),  # independent output tiles
            vmem_limit_bytes=vmem_limit,
        ),
    )(x2, w_bf16, wb2, gamma2, beta2)
    return out.reshape(B, S, H)


def reference(x, w, wb, gamma, beta):
    """Pure-JAX reference with the same bf16 rounding of the dot inputs."""
    xf = x.astype(jnp.float32)
    H = xf.shape[-1]
    mean = jnp.mean(xf, axis=-1, keepdims=True)
    diff = xf - mean
    var_unbiased = jnp.sum(diff * diff, axis=-1, keepdims=True) / (H - 1)
    std = jnp.sqrt(var_unbiased)
    normed = gamma * diff / (std + EPS) + beta
    normed_bf = normed.astype(jnp.bfloat16).astype(jnp.float32)
    w_bf = w.astype(jnp.bfloat16).astype(jnp.float32)
    y = normed_bf @ w_bf + wb
    return (xf + y).astype(x.dtype)


if __name__ == "__main__":
    B, S, H = 2, 8, 32
    key = jax.random.PRNGKey(0)
    kx, kw, kb = jax.random.split(key, 3)

    x = jax.random.normal(kx, (B, S, H), dtype=jnp.float32)
    # Deterministic parameter init (synthetic, not a checkpoint load).
    w = jax.random.normal(kw, (H, H), dtype=jnp.float32) * (1.0 / jnp.sqrt(H))
    wb = jax.random.normal(kb, (H,), dtype=jnp.float32) * 0.01
    gamma = jnp.ones((H,), dtype=jnp.float32)   # LayerNorm a_2
    beta = jnp.zeros((H,), dtype=jnp.float32)   # LayerNorm b_2

    out = sublayer_connection(x, w, wb, gamma, beta)
    out = jax.block_until_ready(out)

    ref = reference(x, w, wb, gamma, beta)
    assert out.shape == (B, S, H)
    # Tolerance covers bf16 MXU inputs + approx reciprocal + fused LN stats.
    assert jnp.allclose(out, ref, atol=2e-2, rtol=2e-2), "mismatch vs reference"

    print("KERNEL_OK")
</pallas_src>

<mosaic_0001>
module attributes {stable_mosaic.version = 11 : i64} {
  func.func @_sublayer_connection_kernel(%arg0: i32, %arg1: i32, %arg2: memref<16x32xf32, #tpu.memory_space<vmem>>, %arg3: memref<32x32xbf16, #tpu.memory_space<vmem>>, %arg4: memref<1x32xf32, #tpu.memory_space<vmem>>, %arg5: memref<1x32xf32, #tpu.memory_space<vmem>>, %arg6: memref<1x32xf32, #tpu.memory_space<vmem>>, %arg7: memref<16x32xf32, #tpu.memory_space<vmem>>) attributes {dimension_semantics = [#tpu.dimension_semantics<parallel>, #tpu.dimension_semantics<parallel>], iteration_bounds = array<i64: 1, 1>, scalar_prefetch = 0 : i64, scratch_operands = 0 : i64, tpu.core_type = #tpu.core_type<tc>, window_params = [{transform_indices = @transform_0, window_bounds = array<i64: 16, 32>}, {pipeline_mode = #tpu.pipeline_mode<synchronous>, transform_indices = @transform_1, window_bounds = array<i64: 32, 32>}, {pipeline_mode = #tpu.pipeline_mode<synchronous>, transform_indices = @transform_2, window_bounds = array<i64: 1, 32>}, {pipeline_mode = #tpu.pipeline_mode<synchronous>, transform_indices = @transform_3, window_bounds = array<i64: 1, 32>}, {pipeline_mode = #tpu.pipeline_mode<synchronous>, transform_indices = @transform_4, window_bounds = array<i64: 1, 32>}, {transform_indices = @transform_5, window_bounds = array<i64: 16, 32>}]} {
    %c0 = arith.constant 0 : index
    %c0_0 = arith.constant 0 : index
    %0 = vector.load %arg2[%c0, %c0_0] : memref<16x32xf32, #tpu.memory_space<vmem>>, vector<16x32xf32>
    %c0_1 = arith.constant 0 : index
    %c0_2 = arith.constant 0 : index
    %1 = vector.load %arg5[%c0_1, %c0_2] : memref<1x32xf32, #tpu.memory_space<vmem>>, vector<1x32xf32>
    %c0_3 = arith.constant 0 : index
    %c0_4 = arith.constant 0 : index
    %2 = vector.load %arg6[%c0_3, %c0_4] : memref<1x32xf32, #tpu.memory_space<vmem>>, vector<1x32xf32>
    %c0_5 = arith.constant 0 : index
    %c0_6 = arith.constant 0 : index
    %3 = vector.load %arg4[%c0_5, %c0_6] : memref<1x32xf32, #tpu.memory_space<vmem>>, vector<1x32xf32>
    %cst = arith.constant dense<0.000000e+00> : vector<16xf32>
    %4 = vector.multi_reduction <add>, %0, %cst [1] : vector<16x32xf32> to vector<16xf32>
    %5 = vector.shape_cast %4 : vector<16xf32> to vector<16x1xf32>
    %6 = arith.mulf %0, %0 : vector<16x32xf32>
    %cst_7 = arith.constant dense<0.000000e+00> : vector<16xf32>
    %7 = vector.multi_reduction <add>, %6, %cst_7 [1] : vector<16x32xf32> to vector<16xf32>
    %8 = vector.shape_cast %7 : vector<16xf32> to vector<16x1xf32>
    %cst_8 = arith.constant 3.125000e-02 : f32
    %9 = vector.broadcast %cst_8 : f32 to vector<16x1xf32>
    %10 = arith.mulf %5, %9 : vector<16x1xf32>
    %11 = arith.mulf %10, %5 : vector<16x1xf32>
    %12 = arith.subf %8, %11 : vector<16x1xf32>
    %cst_9 = arith.constant 0.0322580636 : f32
    %13 = vector.broadcast %cst_9 : f32 to vector<16x1xf32>
    %14 = arith.mulf %12, %13 : vector<16x1xf32>
    %cst_10 = arith.constant 0.000000e+00 : f32
    %15 = vector.broadcast %cst_10 : f32 to vector<16x1xf32>
    %16 = arith.maximumf %14, %15 : vector<16x1xf32>
    %17 = math.sqrt %16 : vector<16x1xf32>
    %cst_11 = arith.constant 9.99999997E-7 : f32
    %18 = vector.broadcast %cst_11 : f32 to vector<16x1xf32>
    %19 = arith.addf %17, %18 : vector<16x1xf32>
    %20 = tpu.reciprocal %19 {approx = true} : vector<16x1xf32> -> vector<16x1xf32>
    %21 = vector.broadcast %10 : vector<16x1xf32> to vector<16x32xf32>
    %22 = arith.subf %0, %21 : vector<16x32xf32>
    %23 = vector.broadcast %1 : vector<1x32xf32> to vector<16x32xf32>
    %24 = arith.mulf %23, %22 : vector<16x32xf32>
    %25 = vector.broadcast %20 : vector<16x1xf32> to vector<16x32xf32>
    %26 = arith.mulf %24, %25 : vector<16x32xf32>
    %27 = vector.broadcast %2 : vector<1x32xf32> to vector<16x32xf32>
    %28 = arith.addf %26, %27 : vector<16x32xf32>
    %29 = arith.truncf %28 : vector<16x32xf32> to vector<16x32xbf16>
    %c0_12 = arith.constant 0 : index
    %c0_13 = arith.constant 0 : index
    %30 = vector.load %arg3[%c0_12, %c0_13] : memref<32x32xbf16, #tpu.memory_space<vmem>>, vector<32x32xbf16>
    %cst_14 = arith.constant dense<0.000000e+00> : vector<16x32xf32>
    %31 = tpu.matmul %29, %30, %cst_14 {dimension_numbers = #tpu.dot_dimension_numbers<[1], [0], [0], [1], [0, 0, 1, 1], [], []>} : vector<16x32xbf16>, vector<32x32xbf16>, vector<16x32xf32> -> vector<16x32xf32>
    %32 = vector.broadcast %3 : vector<1x32xf32> to vector<16x32xf32>
    %33 = arith.addf %31, %32 : vector<16x32xf32>
    %34 = arith.addf %0, %33 : vector<16x32xf32>
    %c0_15 = arith.constant 0 : index
    %c0_16 = arith.constant 0 : index
    %35 = vector.load %arg7[%c0_15, %c0_16] : memref<16x32xf32, #tpu.memory_space<vmem>>, vector<16x32xf32>
    tpu.vector_store %arg7[%c0_15, %c0_16], %34 {strides = array<i32>} : memref<16x32xf32, #tpu.memory_space<vmem>>, vector<16x32xf32>,
    return
  }
  func.func @transform_0(%arg0: i32, %arg1: i32) -> (i32, i32) {
    %c0_i32 = arith.constant 0 : i32
    %c0_i32_0 = arith.constant 0 : i32
    return %arg0, %c0_i32 : i32, i32
  }
  func.func @transform_1(%arg0: i32, %arg1: i32) -> (i32, i32) {
    %c0_i32 = arith.constant 0 : i32
    %c0_i32_0 = arith.constant 0 : i32
    return %c0_i32, %arg1 : i32, i32
  }
  func.func @transform_2(%arg0: i32, %arg1: i32) -> (i32, i32) {
    %c0_i32 = arith.constant 0 : i32
    %c0_i32_0 = arith.constant 0 : i32
    return %c0_i32, %arg1 : i32, i32
  }
  func.func @transform_3(%arg0: i32, %arg1: i32) -> (i32, i32) {
    %c0_i32 = arith.constant 0 : i32
    %c0_i32_0 = arith.constant 0 : i32
    %c0_i32_1 = arith.constant 0 : i32
    return %c0_i32, %c0_i32_0 : i32, i32
  }
  func.func @transform_4(%arg0: i32, %arg1: i32) -> (i32, i32) {
    %c0_i32 = arith.constant 0 : i32
    %c0_i32_0 = arith.constant 0 : i32
    %c0_i32_1 = arith.constant 0 : i32
    return %c0_i32, %c0_i32_0 : i32, i32
  }
  func.func @transform_5(%arg0: i32, %arg1: i32) -> (i32, i32) {
    %c0_i32 = arith.constant 0 : i32
    return %arg0, %arg1 : i32, i32
  }
}

</mosaic_0001>

<bundles_post_ra>
// kernel: tpu_custom_call.1
= control target key start
LH: loop header
LB: loop body
LE: loop exit
PB: predicated region body
PF: predicated region fallthrough
CT: control target
= control target key end

     0   :  { %10 = vsyncpa [#allocation3], 0  ;;  %s426_s0 = inlined_call_operand.hbm [shape: f32[16,32], index: 0, kind: input, shape index: {}]   ;;  %s427_s1 = inlined_call_operand.hbm [shape: bf16[32,32], index: 1, kind: input, shape index: {}]   ;;  %s428_s2 = inlined_call_operand.vmem [shape: f32[1,32], index: 2, kind: input, shape index: {}]   ;;  %s429_s3 = inlined_call_operand.vmem [shape: f32[1,32], index: 3, kind: input, shape index: {}]   ;;  %s430_s4 = inlined_call_operand.vmem [shape: f32[1,32], index: 4, kind: input, shape index: {}]   ;;  %s431_s5 = inlined_call_operand.hbm [shape: f32[16,32], index: 5, kind: output, shape index: {}]  }
   0x1   :  { %11 = vsyncpa [#allocation6], 0 }
   0x2   :  { %12 = vsyncpa [#allocation4], 0  ;;  %s315_s18 = smov [#allocation2]   ;;  %s243_s22 = scalar_lea.hbm %s426_s0, 256 }
   0x3   :  { %s18_s19 = sshll.u32 %s315_s18, 4  ;;  %p244_p0 = scmp.ne.s32.totalorder %s426_s0, %s243_s22  ;;  %s19_s19 = int_to_ptr.vmem [resolvable:$true] %s18_s19 }
   0x4   :  { %p247_p1 = scmp.lt.u32.totalorder %s243_s22, %s426_s0 }
   0x6   :  { %p249_p2 = pnand %p247_p1, %p244_p0 }
   0x8   :  { %252 = shalt.err (!%p249_p2)
}
   0x9   :  { %s253_s27 = scalar_lea.vmem %s19_s19, 256  ;;  %p258_p4 = scmp.lt.s32.totalorder %s19_s19, %s19_s19 }
   0xa   :  { %p254_p3 = scmp.ne.s32.totalorder %s19_s19, %s253_s27  ;;  %p259_p5 = scmp.lt.s32.totalorder %s253_s27, %s253_s27 }
   0xc   :  { %p260_p6 = por %p259_p5, %p258_p4 }
   0xe   :  { %p261_p7 = pnand %p260_p6, %p254_p3 }
  0x10   :  { %264 = shalt.err (!%p261_p7)
}
  0x11   :  { %s316_s28 = smov 128   ;;  %s317_s29 = smov 8  }
  0x12   :  { %24 = dma.hbm_to_vmem [thread:$0]  %s426_s0, 256, %s19_s19, [#allocation3], %s316_s28, %s316_s28, %s317_s29  }
  0x13   :  { %s318_s7 = smov [#allocation5]   ;;  %s265_s11 = scalar_lea.hbm %s427_s1, 256 }
  0x14   :  { %s30_s8 = sshll.u32 %s318_s7, 4  ;;  %p266_p8 = scmp.ne.s32.totalorder %s427_s1, %s265_s11  ;;  %s31_s8 = int_to_ptr.vmem [resolvable:$true] %s30_s8 }
  0x15   :  { %p269_p9 = scmp.lt.u32.totalorder %s265_s11, %s427_s1 }
  0x17   :  { %p271_p10 = pnand %p269_p9, %p266_p8 }
  0x19   :  { %274 = shalt.err (!%p271_p10)
}
  0x1a   :  { %s275_s16 = scalar_lea.vmem %s31_s8, 256  ;;  %p280_p12 = scmp.lt.s32.totalorder %s31_s8, %s31_s8 }
  0x1b   :  { %p276_p11 = scmp.ne.s32.totalorder %s31_s8, %s275_s16  ;;  %p281_p13 = scmp.lt.s32.totalorder %s275_s16, %s275_s16 }
  0x1d   :  { %p282_p0 = por %p281_p13, %p280_p12 }
  0x1f   :  { %p283_p1 = pnand %p282_p0, %p276_p11 }
  0x21   :  { %286 = shalt.err (!%p283_p1)
}
  0x22   :  { %s319_s0 = smov 64   ;;  %s320_s17 = smov 4  }
  0x23   :  { %36 = dma.hbm_to_vmem [thread:$0]  %s427_s1, 256, %s31_s8, [#allocation6], %s319_s0, %s319_s0, %s320_s17  }
  0x24   :  { %309 = dma.done.wait [#allocation3], 256  }
  0x25   :  { %310 = vsyncadd [#allocation3], 4294967040 }
  0x26   :  { %311 = dma.done.wait [#allocation6], 256  }
  0x27   :  { %312 = vsyncadd [#allocation6], 4294967040  ;;  %vm55_vm0 = vcmask 261120   ;;  %v381_v0 = vld [vmem:[#allocation2] sm:$0xff]  ;;  %v383_v1 = vld [vmem:[#allocation2 + $0x8] sm:$0xff]  ;;  %v321_v9 = vmov 0.0  }
  0x28   :  { %v56_v2 = vsel %vm55_vm0, %v381_v0, 0.0  ;;  %v62_v3 = vmul.f32 %v381_v0, %v381_v0  ;;  %v63_v4 = vmul.f32 %v383_v1, %v383_v1  ;;  %v59_v6 = vsel %vm55_vm0, %v383_v1, 0.0  ;;  %v233_v8 = vld [vmem:[#allocation5] sm:$0xff]   ;;  %216 = vmatprep.subr.bf16.mxu0 %v321_v9  ;;  %v234_v10 = vld [vmem:[#allocation5 + $0x8] sm:$0xff]   ;;  %v207_v38 = vld [vmem:[%s429_s3] ss:$0 sm:$0xff] }
  0x29   :  { %57 = vadd.xlane.f32.xlu0 %v56_v2  ;;  %vm322_vm1 = vmmov 0   ;;  %217 = vmatpush3.bf16.msra.mxu0 %v233_v8  ;;  %v208_v45 = vld [vmem:[%s430_s4] ss:$0 sm:$0xff]  ;;  %s323_s3 = smov [#allocation7]  }
  0x2a   :  { %v64_v5 = vsel %vm55_vm0, %v62_v3, 0.0  ;;  %v67_v7 = vsel %vm55_vm0, %v63_v4, 0.0  ;;  %220 = vmatprep.mubr.msk.bf16.mxu0 %vm322_vm1, %v321_v9  ;;  %218 = vmatprep.subr.bf16.mxu0 %v321_v9  ;;  %v209_v50 = vld [vmem:[%s428_s2] ss:$0 sm:$0xff]  ;;  %s194_s25 = sshll.u32 %s323_s3, 4  ;;  %s195_s25 = int_to_ptr.vmem [resolvable:$true] %s194_s25 }
  0x2b   :  { %65 = vadd.xlane.f32.xlu1 %v64_v5  ;;  %s287_s4 = scalar_lea.vmem %s195_s25, 256  ;;  %p292_p3 = scmp.lt.s32.totalorder %s195_s25, %s195_s25 }
  0x2c   :  { %p288_p2 = scmp.ne.s32.totalorder %s195_s25, %s287_s4  ;;  %p293_p4 = scmp.lt.s32.totalorder %s287_s4, %s287_s4 }
  0x2d   :  { %60 = vadd.xlane.f32.xlu0 %v59_v6  ;;  %219 = vmatpush3.bf16.msra.mxu0 %v234_v10 }
  0x2e   :  { %p294_p5 = por %p293_p4, %p292_p3 }
  0x2f   :  { %68 = vadd.xlane.f32.xlu1 %v67_v7 }
  0x30   :  { %p295_p6 = pnand %p294_p5, %p288_p2 }
  0xb6   :  { %v58_v11 = vpop.xlane.xlu0 %57 }
  0xb7   :  { %v70_v12 = vmul.f32 0.03125, %v58_v11 }
  0xb8   :  { %v66_v13 = vpop.xlane.xlu1 %65 }
  0xb9   :  { %v72_v14 = vmul.f32 %v70_v12, %v58_v11  ;;  %v98_v37 = vsub.f32 %v381_v0, %v70_v12 }
  0xba   :  { %v61_v15 = vpop.xlane.xlu0 %60 }
  0xbb   :  { %v74_v16 = vsub.f32 %v66_v13, %v72_v14  ;;  %v71_v17 = vmul.f32 0.03125, %v61_v15  ;;  %v106_v41 = vmul.f32 %v207_v38, %v98_v37 }
  0xbc   :  { %v69_v18 = vpop.xlane.xlu1 %68 }
  0xbd   :  { %v76_v19 = vmul.f32 0.032258064, %v74_v16  ;;  %v73_v20 = vmul.f32 %v71_v17, %v61_v15  ;;  %v99_v39 = vsub.f32 %v383_v1, %v71_v17 }
  0xbf   :  { %v78_v21 = vmax.f32 %v76_v19, 0.0  ;;  %v75_v22 = vsub.f32 %v69_v18, %v73_v20  ;;  %v107_v43 = vmul.f32 %v207_v38, %v99_v39 }
  0xc1   :  { %235 = vrsqrt.f32 %v78_v21  ;;  %v77_v23 = vmul.f32 0.032258064, %v75_v22  ;;  %vm82_vm2 = vcmp.eq.f32.partialorder %v78_v21, inf  ;;  %v85_v27 = vand.u32 2147483648, %v78_v21 }
  0xc2   :  { %vm84_vm3 = vcmp.eq.f32.partialorder %v78_v21, 0.0 }
  0xc3   :  { %v79_v24 = vmax.f32 %v77_v23, 0.0 }
  0xc5   :  { %237 = vrsqrt.f32 %v79_v24  ;;  %vm89_vm4 = vcmp.eq.f32.partialorder %v79_v24, inf  ;;  %v92_v33 = vand.u32 2147483648, %v79_v24  ;;  %vm91_vm5 = vcmp.eq.f32.partialorder %v79_v24, 0.0 }
  0xcb   :  { %v236_v25 = vpop.eup %235 }
  0xcc   :  { %v81_v26 = vmul.f32 %v236_v25, %v78_v21 }
  0xce   :  { %v83_v28 = vsel %vm82_vm2, %v78_v21, %v81_v26 }
  0xcf   :  { %v86_v29 = vsel %vm84_vm3, %v85_v27, %v83_v28  ;;  %v238_v30 = vpop.eup %237 }
  0xd0   :  { %v94_v31 = vadd.f32 1e-06, %v86_v29  ;;  %v88_v32 = vmul.f32 %v238_v30, %v79_v24 }
  0xd2   :  { %239 = vrcp.f32 %v94_v31  ;;  %v90_v34 = vsel %vm89_vm4, %v79_v24, %v88_v32 }
  0xd3   :  { %v93_v35 = vsel %vm91_vm5, %v92_v33, %v90_v34 }
  0xd4   :  { %v95_v36 = vadd.f32 1e-06, %v93_v35 }
  0xd6   :  { %241 = vrcp.f32 %v95_v36 }
  0xdc   :  { %v240_v40 = vpop.eup %239 }
  0xdd   :  { %v108_v42 = vmul.f32 %v240_v40, %v106_v41 }
  0xdf   :  { %v116_v47 = vadd.f32 %v208_v45, %v108_v42 }
  0xe0   :  { %v242_v44 = vpop.eup %241 }
  0xe1   :  { %v109_v46 = vmul.f32 %v242_v44, %v107_v43 }
  0xe3   :  { %v117_v48 = vadd.f32 %v208_v45, %v109_v46 }
  0xe5   :  { %v118_v49 = vpack.c.bf16 %v117_v48, %v116_v47 }
  0xe7   :  { %221 = vmatmul.mubr.msk.bf16.vlgmr.msra.gmra.mrb[0].mxu0 %vm55_vm0, %v118_v49 }
 0x1ba   :  { %v178_v51 = vpop.f32.mrb[0].mxu0 }
 0x1bb   :  { %v179_v52 = vadd.f32 %v209_v50, %v178_v51  ;;  %v222_v53 = vpop.f32.mrb[1].mxu0 }
 0x1bc   :  { %v181_v54 = vpop.f32.mrb[2].mxu0 }
 0x1bd   :  { %v185_v55 = vadd.f32 %v179_v52, %v381_v0  ;;  %v182_v56 = vadd.f32 %v209_v50, %v181_v54  ;;  %v223_v57 = vpop.f32.mrb[3].mxu0 }
 0x1bf   :  { %187 = vst.msk [vmem:[#allocation7] sm:$0xff] %vm55_vm0, %v185_v55  ;;  %v186_v58 = vadd.f32 %v182_v56, %v383_v1 }
 0x1c1   :  { %188 = vst.msk [vmem:[#allocation7 + $0x8] sm:$0xff] %vm55_vm0, %v186_v58 }
 0x1c2   :  { %298 = shalt.err (!%p295_p6)
}
 0x1c3   :  { %s299_s27 = scalar_lea.hbm %s431_s5, 256 }
 0x1c4   :  { %p300_p7 = scmp.ne.s32.totalorder %s431_s5, %s299_s27  ;;  %p303_p8 = scmp.lt.u32.totalorder %s299_s27, %s431_s5 }
 0x1c6   :  { %p305_p9 = pnand %p303_p8, %p300_p7 }
 0x1c8   :  { %308 = shalt.err (!%p305_p9)
}
 0x1c9   :  { %200 = dma.vmem_to_hbm [thread:$0]  %s195_s25, 256, %s431_s5, [#allocation4], %s316_s28, %s316_s28, %s317_s29  }
 0x1ca   :  { %313 = dma.done.wait [#allocation4], 256  }
 0x1cb   :  { %314 = vsyncadd [#allocation4], 4294967040 }
 0x1cc   :  { %204 = vsyncpa [#allocation3], 1 }
 0x1cd   :  { %205 = vsyncpa [#allocation6], 1 }
 0x1ce   :  { %206 = vsyncpa [#allocation4], 1 }

</bundles_post_ra>
